<compile_context>
chip_gen: v7x
topology: tpu7x:2x2x1
jax: 0.10.0
libtpu: 0.0.40
codegen_flags: <defaults>
</compile_context>

<pallas_src>
import jax
import jax.numpy as jnp
from jax.experimental import pallas as pl
from jax.experimental.pallas import tpu as pltpu

_LANE = 128        # TPU lane width
_ROW_ALIGN = 16    # bf16 sublane packing: rows travel in pairs
_H1, _H2 = 64, 32  # MLPGraph hidden widths


def _round_up(x, m):
    return ((x + m - 1) // m) * m


def _mlp_kernel(x_ref, w1_ref, b1_ref, w2_ref, b2_ref, w3_ref, b3_ref, o_ref):
    # Layer 1: bf16 adjacency tile @ bf16 W1 on the MXU, f32 accumulation.
    h1 = jnp.dot(x_ref[...], w1_ref[...], preferred_element_type=jnp.float32)
    h1 = jnp.maximum(h1 + b1_ref[...], 0.0)
    # Layers 2/3 are tiny (128x128 padded) - keep them f32 end to end.
    h2 = jnp.dot(h1, w2_ref[...], preferred_element_type=jnp.float32)
    h2 = jnp.maximum(h2 + b2_ref[...], 0.0)
    out = jnp.dot(h2, w3_ref[...], preferred_element_type=jnp.float32) + b3_ref[...]
    o_ref[...] = out.astype(o_ref.dtype)


def _choose_tile_m(n_rows, n_cols):
    # Target ~8 MiB per bf16 adjacency tile so the double-buffered pipeline
    # stays well under the scoped-VMEM defaults on every generation
    # (including v7x's 64 MiB physical VMEM), capped at 512 rows.
    target_bytes = 8 * 1024 * 1024
    tile = target_bytes // max(1, 2 * n_cols)          # bf16 rows per tile
    tile = max(_ROW_ALIGN, min(512, (tile // _ROW_ALIGN) * _ROW_ALIGN))
    return min(tile, _round_up(n_rows, _ROW_ALIGN))


def mlp_graph_forward(adj, params):
    """adj: [N, num_inputs] dense adjacency (float32).
    params: dict from make_params (lane-padded weights; W1 stored bf16)."""
    n_rows, num_inputs = adj.shape
    num_outputs = params["num_outputs"]
    w1, b1 = params["w1"], params["b1"]
    w2, b2 = params["w2"], params["b2"]
    w3, b3 = params["w3"], params["b3"]

    h1p, h2p, noutp = w1.shape[1], w2.shape[1], w3.shape[1]

    tile_m = _choose_tile_m(n_rows, num_inputs)
    m_pad = _round_up(n_rows, tile_m)

    # bf16 adjacency (0/1/small-int entries are exact) halves HBM traffic for
    # the dominant [N, N] read.
    x = adj.astype(jnp.bfloat16)
    if m_pad != n_rows:
        x = jnp.pad(x, ((0, m_pad - n_rows), (0, 0)))

    grid = (m_pad // tile_m,)
    const = lambda i: (0, 0)

    # Rough VMEM budget: double-buffered adjacency/output tiles + resident
    # weights + intermediates, with headroom; clamp to v7x's 64 MiB.
    vmem_need = (
        2 * tile_m * num_inputs * 2            # 2x bf16 adjacency tile
        + 2 * tile_m * noutp * 4               # 2x f32 output tile
        + num_inputs * h1p * 2                 # resident W1 (bf16)
        + (h1p * h2p + h2p * noutp + h1p + h2p + noutp) * 4
        + 4 * tile_m * max(h1p, h2p) * 4       # intermediates + headroom
    )
    vmem_limit = int(min(max(vmem_need, 16 * 1024 * 1024), 64 * 1024 * 1024))

    out_padded = pl.pallas_call(
        _mlp_kernel,
        out_shape=jax.ShapeDtypeStruct((m_pad, noutp), jnp.float32),
        grid=grid,
        in_specs=[
            pl.BlockSpec((tile_m, num_inputs), lambda i: (i, 0)),  # adjacency tile
            pl.BlockSpec((num_inputs, h1p), const),                # W1 (resident)
            pl.BlockSpec((1, h1p), const),                         # b1
            pl.BlockSpec((h1p, h2p), const),                       # W2
            pl.BlockSpec((1, h2p), const),                         # b2
            pl.BlockSpec((h2p, noutp), const),                     # W3
            pl.BlockSpec((1, noutp), const),                       # b3
        ],
        out_specs=pl.BlockSpec((tile_m, noutp), lambda i: (i, 0)),
        compiler_params=pltpu.CompilerParams(
            dimension_semantics=("parallel",),   # 2 TCs on v7x; no-op on v5e/v6e
            vmem_limit_bytes=vmem_limit,
        ),
    )(x, w1, b1, w2, b2, w3, b3)

    # Slice the lane-padded / row-padded slab back to the logical shape.
    return out_padded[:n_rows, :num_outputs]


def make_params(key, num_inputs, num_outputs):
    """nn.Linear-style init U(-1/sqrt(fan_in), +1/sqrt(fan_in)), stored
    pre-transposed as [in, out] and zero-padded so every feature axis is a
    multiple of 128 lanes (lane-dense vregs, unmasked stores).
    W1 is cast to bf16 (MXU input); padded columns/rows are zero so padding
    never changes the math."""
    def linear(k, fan_in, fan_out):
        kw, kb = jax.random.split(k)
        bound = 1.0 / jnp.sqrt(float(fan_in))
        w = jax.random.uniform(kw, (fan_in, fan_out), jnp.float32, -bound, bound)
        b = jax.random.uniform(kb, (1, fan_out), jnp.float32, -bound, bound)
        return w, b

    k1, k2, k3 = jax.random.split(key, 3)
    w1, b1 = linear(k1, num_inputs, _H1)
    w2, b2 = linear(k2, _H1, _H2)
    w3, b3 = linear(k3, _H2, num_outputs)

    h1p = _round_up(_H1, _LANE)
    h2p = _round_up(_H2, _LANE)
    noutp = _round_up(num_outputs, _LANE)

    def pad2(a, rows, cols):
        return jnp.pad(a, ((0, rows - a.shape[0]), (0, cols - a.shape[1])))

    return {
        "w1": pad2(w1, num_inputs, h1p).astype(jnp.bfloat16),
        "b1": pad2(b1, 1, h1p),
        "w2": pad2(w2, h1p, h2p),
        "b2": pad2(b2, 1, h2p),
        "w3": pad2(w3, h2p, noutp),
        "b3": pad2(b3, 1, noutp),
        "num_outputs": num_outputs,
        # Unpadded f32 copies for the pure-JAX reference / inspection.
        "ref": {"w1": w1, "b1": b1, "w2": w2, "b2": b2, "w3": w3, "b3": b3},
    }


def to_dense_adj(edge_index, num_nodes):
    """Dense adjacency from edge_index [2, E]. Uses scatter-ADD so duplicate
    edges sum, matching torch_geometric's to_dense_adj()."""
    adj = jnp.zeros((num_nodes, num_nodes), jnp.float32)
    adj = adj.at[edge_index[0], edge_index[1]].add(1.0)
    return adj


if __name__ == "__main__":
    # Small synthetic graph: num_inputs == num_nodes == 16, num_outputs == 8.
    num_nodes = 16          # == num_inputs (adjacency is N x N)
    num_outputs = 8
    num_edges = 24

    key = jax.random.PRNGKey(0)
    k_edges, k_params = jax.random.split(key)

    # Deterministic random edge_index [2, E].
    edge_index = jax.random.randint(k_edges, (2, num_edges), 0, num_nodes)

    adj = to_dense_adj(edge_index, num_nodes)          # [16, 16]
    params = make_params(k_params, num_nodes, num_outputs)

    out = mlp_graph_forward(adj, params)               # [16, 8]
    out = jax.block_until_ready(out)

    # Pure-JAX reference (same bf16 rounding on layer-1 MXU inputs).
    ref_p = params["ref"]
    x_bf = adj.astype(jnp.bfloat16)
    w1_bf = ref_p["w1"].astype(jnp.bfloat16)
    h = jnp.maximum(
        jnp.dot(x_bf, w1_bf, preferred_element_type=jnp.float32) + ref_p["b1"], 0.0)
    h = jnp.maximum(h @ ref_p["w2"] + ref_p["b2"], 0.0)
    ref = h @ ref_p["w3"] + ref_p["b3"]

    assert out.shape == (num_nodes, num_outputs)
    assert jnp.allclose(out, ref, atol=1e-4, rtol=1e-4), (
        f"max abs err {jnp.max(jnp.abs(out - ref))}")

    print("KERNEL_OK")
</pallas_src>

<mosaic_0001>
module attributes {stable_mosaic.version = 11 : i64} {
  func.func @_mlp_kernel(%arg0: i32, %arg1: memref<16x16xbf16, #tpu.memory_space<vmem>>, %arg2: memref<16x128xbf16, #tpu.memory_space<vmem>>, %arg3: memref<1x128xf32, #tpu.memory_space<vmem>>, %arg4: memref<128x128xf32, #tpu.memory_space<vmem>>, %arg5: memref<1x128xf32, #tpu.memory_space<vmem>>, %arg6: memref<128x128xf32, #tpu.memory_space<vmem>>, %arg7: memref<1x128xf32, #tpu.memory_space<vmem>>, %arg8: memref<16x128xf32, #tpu.memory_space<vmem>>) attributes {dimension_semantics = [#tpu.dimension_semantics<parallel>], iteration_bounds = array<i64: 1>, scalar_prefetch = 0 : i64, scratch_operands = 0 : i64, tpu.core_type = #tpu.core_type<tc>, window_params = [{transform_indices = @transform_0, window_bounds = array<i64: 16, 16>}, {pipeline_mode = #tpu.pipeline_mode<synchronous>, transform_indices = @transform_1, window_bounds = array<i64: 16, 128>}, {pipeline_mode = #tpu.pipeline_mode<synchronous>, transform_indices = @transform_2, window_bounds = array<i64: 1, 128>}, {pipeline_mode = #tpu.pipeline_mode<synchronous>, transform_indices = @transform_3, window_bounds = array<i64: 128, 128>}, {pipeline_mode = #tpu.pipeline_mode<synchronous>, transform_indices = @transform_4, window_bounds = array<i64: 1, 128>}, {pipeline_mode = #tpu.pipeline_mode<synchronous>, transform_indices = @transform_5, window_bounds = array<i64: 128, 128>}, {pipeline_mode = #tpu.pipeline_mode<synchronous>, transform_indices = @transform_6, window_bounds = array<i64: 1, 128>}, {transform_indices = @transform_7, window_bounds = array<i64: 16, 128>}]} {
    %c0 = arith.constant 0 : index
    %c0_0 = arith.constant 0 : index
    %0 = vector.load %arg1[%c0, %c0_0] : memref<16x16xbf16, #tpu.memory_space<vmem>>, vector<16x16xbf16>
    %c0_1 = arith.constant 0 : index
    %c0_2 = arith.constant 0 : index
    %1 = vector.load %arg2[%c0_1, %c0_2] : memref<16x128xbf16, #tpu.memory_space<vmem>>, vector<16x128xbf16>
    %cst = arith.constant dense<0.000000e+00> : vector<16x128xf32>
    %2 = tpu.matmul %0, %1, %cst {dimension_numbers = #tpu.dot_dimension_numbers<[1], [0], [0], [1], [0, 0, 1, 1], [], []>} : vector<16x16xbf16>, vector<16x128xbf16>, vector<16x128xf32> -> vector<16x128xf32>
    %c0_3 = arith.constant 0 : index
    %c0_4 = arith.constant 0 : index
    %3 = vector.load %arg3[%c0_3, %c0_4] : memref<1x128xf32, #tpu.memory_space<vmem>>, vector<1x128xf32>
    %4 = vector.broadcast %3 : vector<1x128xf32> to vector<16x128xf32>
    %5 = arith.addf %2, %4 : vector<16x128xf32>
    %cst_5 = arith.constant 0.000000e+00 : f32
    %6 = vector.broadcast %cst_5 : f32 to vector<16x128xf32>
    %7 = arith.maximumf %5, %6 : vector<16x128xf32>
    %c0_6 = arith.constant 0 : index
    %c0_7 = arith.constant 0 : index
    %8 = vector.load %arg4[%c0_6, %c0_7] : memref<128x128xf32, #tpu.memory_space<vmem>>, vector<128x128xf32>
    %cst_8 = arith.constant dense<0.000000e+00> : vector<16x128xf32>
    %9 = tpu.matmul %7, %8, %cst_8 {dimension_numbers = #tpu.dot_dimension_numbers<[1], [0], [0], [1], [0, 0, 1, 1], [], []>} : vector<16x128xf32>, vector<128x128xf32>, vector<16x128xf32> -> vector<16x128xf32>
    %c0_9 = arith.constant 0 : index
    %c0_10 = arith.constant 0 : index
    %10 = vector.load %arg5[%c0_9, %c0_10] : memref<1x128xf32, #tpu.memory_space<vmem>>, vector<1x128xf32>
    %11 = vector.broadcast %10 : vector<1x128xf32> to vector<16x128xf32>
    %12 = arith.addf %9, %11 : vector<16x128xf32>
    %cst_11 = arith.constant 0.000000e+00 : f32
    %13 = vector.broadcast %cst_11 : f32 to vector<16x128xf32>
    %14 = arith.maximumf %12, %13 : vector<16x128xf32>
    %c0_12 = arith.constant 0 : index
    %c0_13 = arith.constant 0 : index
    %15 = vector.load %arg6[%c0_12, %c0_13] : memref<128x128xf32, #tpu.memory_space<vmem>>, vector<128x128xf32>
    %cst_14 = arith.constant dense<0.000000e+00> : vector<16x128xf32>
    %16 = tpu.matmul %14, %15, %cst_14 {dimension_numbers = #tpu.dot_dimension_numbers<[1], [0], [0], [1], [0, 0, 1, 1], [], []>} : vector<16x128xf32>, vector<128x128xf32>, vector<16x128xf32> -> vector<16x128xf32>
    %c0_15 = arith.constant 0 : index
    %c0_16 = arith.constant 0 : index
    %17 = vector.load %arg7[%c0_15, %c0_16] : memref<1x128xf32, #tpu.memory_space<vmem>>, vector<1x128xf32>
    %18 = vector.broadcast %17 : vector<1x128xf32> to vector<16x128xf32>
    %19 = arith.addf %16, %18 : vector<16x128xf32>
    %c0_17 = arith.constant 0 : index
    %c0_18 = arith.constant 0 : index
    %20 = vector.load %arg8[%c0_17, %c0_18] : memref<16x128xf32, #tpu.memory_space<vmem>>, vector<16x128xf32>
    tpu.vector_store %arg8[%c0_17, %c0_18], %19 {strides = array<i32>} : memref<16x128xf32, #tpu.memory_space<vmem>>, vector<16x128xf32>,
    return
  }
  func.func @transform_0(%arg0: i32) -> (i32, i32) {
    %c0_i32 = arith.constant 0 : i32
    %c0_i32_0 = arith.constant 0 : i32
    return %arg0, %c0_i32 : i32, i32
  }
  func.func @transform_1(%arg0: i32) -> (i32, i32) {
    %c0_i32 = arith.constant 0 : i32
    %c0_i32_0 = arith.constant 0 : i32
    %c0_i32_1 = arith.constant 0 : i32
    return %c0_i32, %c0_i32_0 : i32, i32
  }
  func.func @transform_2(%arg0: i32) -> (i32, i32) {
    %c0_i32 = arith.constant 0 : i32
    %c0_i32_0 = arith.constant 0 : i32
    %c0_i32_1 = arith.constant 0 : i32
    return %c0_i32, %c0_i32_0 : i32, i32
  }
  func.func @transform_3(%arg0: i32) -> (i32, i32) {
    %c0_i32 = arith.constant 0 : i32
    %c0_i32_0 = arith.constant 0 : i32
    %c0_i32_1 = arith.constant 0 : i32
    return %c0_i32, %c0_i32_0 : i32, i32
  }
  func.func @transform_4(%arg0: i32) -> (i32, i32) {
    %c0_i32 = arith.constant 0 : i32
    %c0_i32_0 = arith.constant 0 : i32
    %c0_i32_1 = arith.constant 0 : i32
    return %c0_i32, %c0_i32_0 : i32, i32
  }
  func.func @transform_5(%arg0: i32) -> (i32, i32) {
    %c0_i32 = arith.constant 0 : i32
    %c0_i32_0 = arith.constant 0 : i32
    %c0_i32_1 = arith.constant 0 : i32
    return %c0_i32, %c0_i32_0 : i32, i32
  }
  func.func @transform_6(%arg0: i32) -> (i32, i32) {
    %c0_i32 = arith.constant 0 : i32
    %c0_i32_0 = arith.constant 0 : i32
    %c0_i32_1 = arith.constant 0 : i32
    return %c0_i32, %c0_i32_0 : i32, i32
  }
  func.func @transform_7(%arg0: i32) -> (i32, i32) {
    %c0_i32 = arith.constant 0 : i32
    %c0_i32_0 = arith.constant 0 : i32
    return %arg0, %c0_i32 : i32, i32
  }
}

</mosaic_0001>

<bundles_post_ra>
// kernel: tpu_custom_call.1
= control target key start
LH: loop header
LB: loop body
LE: loop exit
PB: predicated region body
PF: predicated region fallthrough
CT: control target
= control target key end

     0   :  { %12 = vsyncpa [#allocation3], 0  ;;  %s822_s0 = inlined_call_operand.hbm [shape: bf16[16,16], index: 0, kind: input, shape index: {}]   ;;  %s823_s1 = inlined_call_operand.hbm [shape: bf16[16,128], index: 1, kind: input, shape index: {}]   ;;  %s824_s2 = inlined_call_operand.vmem [shape: f32[1,128], index: 2, kind: input, shape index: {}]   ;;  %s825_s3 = inlined_call_operand.hbm [shape: f32[128,128], index: 3, kind: input, shape index: {}]   ;;  %s826_s4 = inlined_call_operand.vmem [shape: f32[1,128], index: 4, kind: input, shape index: {}]   ;;  %s827_s5 = inlined_call_operand.hbm [shape: f32[128,128], index: 5, kind: input, shape index: {}]   ;;  %s828_s6 = inlined_call_operand.vmem [shape: f32[1,128], index: 6, kind: input, shape index: {}]   ;;  %s829_s7 = inlined_call_operand.hbm [shape: f32[16,128], index: 7, kind: output, shape index: {}]  }
   0x1   :  { %13 = vsyncpa [#allocation6], 0 }
   0x2   :  { %14 = vsyncpa [#allocation9], 0 }
   0x3   :  { %15 = vsyncpa [#allocation4], 0  ;;  %s686_s24 = smov [#allocation5]   ;;  %s687_s26 = smov [#allocation2]  }
   0x4   :  { %s33_s25 = sshll.u32 %s686_s24, 4  ;;  %s21_s27 = sshll.u32 %s687_s26, 4  ;;  %s34_s25 = int_to_ptr.vmem [resolvable:$true] %s33_s25  ;;  %s737_s27 = int_to_ptr.vmem [resolvable:$true] %s21_s27 }
   0x5   :  { %s568_s30 = scalar_lea.hbm %s823_s1, 128 }
   0x6   :  { %p569_p0 = scmp.ne.s32.totalorder %s823_s1, %s568_s30  ;;  %p572_p1 = scmp.lt.u32.totalorder %s568_s30, %s823_s1 }
   0x8   :  { %p574_p2 = pnand %p572_p1, %p569_p0 }
   0xa   :  { %577 = shalt.err (!%p574_p2)
}
   0xb   :  { %s578_s12 = scalar_lea.vmem %s34_s25, 128  ;;  %p583_p4 = scmp.lt.s32.totalorder %s34_s25, %s34_s25 }
   0xc   :  { %p579_p3 = scmp.ne.s32.totalorder %s34_s25, %s578_s12  ;;  %p584_p5 = scmp.lt.s32.totalorder %s578_s12, %s578_s12 }
   0xe   :  { %p585_p6 = por %p584_p5, %p583_p4 }
  0x10   :  { %p586_p7 = pnand %p585_p6, %p579_p3 }
  0x12   :  { %589 = shalt.err (!%p586_p7)
}
  0x13   :  { %s688_s13 = smov 64   ;;  %s689_s14 = smov 4  }
  0x14   :  { %39 = dma.hbm_to_vmem [thread:$0]  %s823_s1, 128, %s34_s25, [#allocation6], %s688_s13, %s688_s13, %s689_s14  }
  0x15   :  { %s590_s19 = scalar_lea.hbm %s822_s0, 128 }
  0x16   :  { %p591_p8 = scmp.ne.s32.totalorder %s822_s0, %s590_s19  ;;  %p594_p9 = scmp.lt.u32.totalorder %s590_s19, %s822_s0 }
  0x18   :  { %p596_p10 = pnand %p594_p9, %p591_p8 }
  0x1a   :  { %599 = shalt.err (!%p596_p10)
}
  0x1b   :  { %s600_s24 = scalar_lea.vmem %s737_s27, 128  ;;  %p605_p12 = scmp.lt.s32.totalorder %s737_s27, %s737_s27 }
  0x1c   :  { %p601_p11 = scmp.ne.s32.totalorder %s737_s27, %s600_s24  ;;  %p606_p13 = scmp.lt.s32.totalorder %s600_s24, %s600_s24 }
  0x1e   :  { %p607_p0 = por %p606_p13, %p605_p12 }
  0x20   :  { %p608_p1 = pnand %p607_p0, %p601_p11 }
  0x22   :  { %611 = shalt.err (!%p608_p1)
}
  0x23   :  { %27 = dma.hbm_to_vmem [thread:$0]  %s822_s0, 128, %s737_s27, [#allocation3], %s688_s13, %s688_s13, %s689_s14  }
  0x24   :  { %s690_s26 = smov [#allocation7]   ;;  %s612_s8 = scalar_lea.hbm %s825_s3, 2048 }
  0x25   :  { %s47_s28 = sshll.u32 %s690_s26, 4  ;;  %p613_p2 = scmp.ne.s32.totalorder %s825_s3, %s612_s8  ;;  %s48_s28 = int_to_ptr.vmem [resolvable:$true] %s47_s28 }
  0x26   :  { %p616_p3 = scmp.lt.u32.totalorder %s612_s8, %s825_s3 }
  0x28   :  { %p618_p4 = pnand %p616_p3, %p613_p2 }
  0x2a   :  { %621 = shalt.err (!%p618_p4)
}
  0x2b   :  { %s622_s15 = scalar_lea.vmem %s48_s28, 2048  ;;  %p627_p6 = scmp.lt.s32.totalorder %s48_s28, %s48_s28 }
  0x2c   :  { %p623_p5 = scmp.ne.s32.totalorder %s48_s28, %s622_s15  ;;  %p628_p7 = scmp.lt.s32.totalorder %s622_s15, %s622_s15 }
  0x2e   :  { %p629_p8 = por %p628_p7, %p627_p6 }
  0x30   :  { %p630_p9 = pnand %p629_p8, %p623_p5 }
  0x32   :  { %633 = shalt.err (!%p630_p9)
}
  0x33   :  { %s691_s0 = smov 128   ;;  %s692_s27 = smov 8  }
  0x34   :  { %53 = dma.hbm_to_vmem [thread:$0]  %s825_s3, 2048, %s48_s28, [#allocation6], %s691_s0, %s691_s0, %s692_s27  }
  0x35   :  { %s693_s16 = smov [#allocation8]   ;;  %s634_s20 = scalar_lea.hbm %s827_s5, 2048 }
  0x36   :  { %s61_s17 = sshll.u32 %s693_s16, 4  ;;  %p635_p10 = scmp.ne.s32.totalorder %s827_s5, %s634_s20  ;;  %s62_s17 = int_to_ptr.vmem [resolvable:$true] %s61_s17 }
  0x37   :  { %p638_p11 = scmp.lt.u32.totalorder %s634_s20, %s827_s5 }
  0x39   :  { %p640_p12 = pnand %p638_p11, %p635_p10 }
  0x3b   :  { %643 = shalt.err (!%p640_p12)
}
  0x3c   :  { %s644_s1 = scalar_lea.vmem %s62_s17, 2048  ;;  %p649_p0 = scmp.lt.s32.totalorder %s62_s17, %s62_s17 }
  0x3d   :  { %p645_p13 = scmp.ne.s32.totalorder %s62_s17, %s644_s1  ;;  %p650_p1 = scmp.lt.s32.totalorder %s644_s1, %s644_s1 }
  0x3f   :  { %p651_p2 = por %p650_p1, %p649_p0 }
  0x41   :  { %p652_p3 = pnand %p651_p2, %p645_p13 }
  0x43   :  { %655 = shalt.err (!%p652_p3)
}
  0x44   :  { %67 = dma.hbm_to_vmem [thread:$0]  %s827_s5, 2048, %s62_s17, [#allocation9], %s691_s0, %s691_s0, %s692_s27  }
  0x45   :  { %678 = dma.done.wait [#allocation3], 128  }
  0x46   :  { %679 = vsyncadd [#allocation3], 4294967168 }
  0x47   :  { %680 = dma.done.wait [#allocation6], 2176  }
  0x48   :  { %681 = vsyncadd [#allocation6], 4294965120 }
  0x49   :  { %682 = dma.done.wait [#allocation9], 2048  }
  0x4a   :  { %683 = vsyncadd [#allocation9], 4294965248  ;;  %v694_v0 = vmov 0.0   ;;  %vm695_vm0 = vmmov 0   ;;  %v566_v1 = vld [vmem:[#allocation5] sm:$0xff]   ;;  %v567_v2 = vld [vmem:[#allocation2] sm:$0xff]  }
  0x4b   :  { %415 = vmatprep.subr.bf16.mxu0 %v694_v0  ;;  %417 = vmatprep.mubr.msk.bf16.mxu0 %vm695_vm0, %v694_v0  ;;  %vm105_vm1 = vcmask 130048   ;;  %v152_v3 = vld [vmem:[#allocation7] sm:$0xff]  ;;  %v153_v4 = vld [vmem:[#allocation7 + $0x8] sm:$0xff]  ;;  %v154_v5 = vld [vmem:[#allocation7 + $0x10] sm:$0xff]  ;;  %s696_s8 = smov [#allocation10]  }
  0x4c   :  { %416 = vmatpush3.bf16.msra.mxu0 %v566_v1  ;;  %v491_v6 = vpack.c.bf16 %v153_v4, %v152_v3  ;;  %v155_v7 = vld [vmem:[#allocation7 + $0x18] sm:$0xff]  ;;  %v156_v9 = vld [vmem:[#allocation7 + $0x20] sm:$0xff]  ;;  %v157_v10 = vld [vmem:[#allocation7 + $0x28] sm:$0xff]  ;;  %s357_s9 = sshll.u32 %s696_s8, 4  ;;  %s358_s9 = int_to_ptr.vmem [resolvable:$true] %s357_s9 }
  0x4d   :  { %v495_v8 = vpack.c.bf16 %v155_v7, %v154_v5  ;;  %v499_v11 = vpack.c.bf16 %v157_v10, %v156_v9  ;;  %v158_v12 = vld [vmem:[#allocation7 + $0x30] sm:$0xff]  ;;  %v159_v13 = vld [vmem:[#allocation7 + $0x38] sm:$0xff]  ;;  %v160_v15 = vld [vmem:[#allocation7 + $0x40] sm:$0xff]  ;;  %p661_p5 = scmp.lt.s32.totalorder %s358_s9, %s358_s9 }
  0x4e   :  { %492 = vmatprep.subr.bf16.mxu1 %v491_v6  ;;  %v503_v14 = vpack.c.bf16 %v159_v13, %v158_v12  ;;  %v161_v16 = vld [vmem:[#allocation7 + $0x48] sm:$0xff]  ;;  %v162_v18 = vld [vmem:[#allocation7 + $0x50] sm:$0xff]  ;;  %v163_v19 = vld [vmem:[#allocation7 + $0x58] sm:$0xff] }
  0x4f   :  { %418 = vmatmul.mubr.msk.bf16.vlgmr.msra.gmra.mrb[0].mxu0 %vm105_vm1, %v567_v2  ;;  %494 = vmatpush3.bf16.msra.mxu1 %v491_v6  ;;  %v507_v17 = vpack.c.bf16 %v161_v16, %v160_v15  ;;  %v511_v20 = vpack.c.bf16 %v163_v19, %v162_v18  ;;  %v164_v21 = vld [vmem:[#allocation7 + $0x60] sm:$0xff]  ;;  %v165_v22 = vld [vmem:[#allocation7 + $0x68] sm:$0xff]  ;;  %v166_v24 = vld [vmem:[#allocation7 + $0x70] sm:$0xff] }
  0x50   :  { %496 = vmatprep.subr.bf16.mxu1 %v495_v8  ;;  %v515_v23 = vpack.c.bf16 %v165_v22, %v164_v21  ;;  %v167_v25 = vld [vmem:[#allocation7 + $0x78] sm:$0xff]  ;;  %v252_v27 = vld [vmem:[#allocation8] sm:$0xff]  ;;  %v253_v28 = vld [vmem:[#allocation8 + $0x8] sm:$0xff] }
  0x51   :  { %v519_v26 = vpack.c.bf16 %v167_v25, %v166_v24  ;;  %v254_v29 = vld [vmem:[#allocation8 + $0x10] sm:$0xff]  ;;  %v523_v30 = vpack.c.bf16 %v253_v28, %v252_v27  ;;  %v255_v31 = vld [vmem:[#allocation8 + $0x18] sm:$0xff]  ;;  %v256_v33 = vld [vmem:[#allocation8 + $0x20] sm:$0xff] }
  0x52   :  { %v527_v32 = vpack.c.bf16 %v255_v31, %v254_v29  ;;  %v257_v34 = vld [vmem:[#allocation8 + $0x28] sm:$0xff]  ;;  %v258_v36 = vld [vmem:[#allocation8 + $0x30] sm:$0xff]  ;;  %v259_v37 = vld [vmem:[#allocation8 + $0x38] sm:$0xff] }
  0x53   :  { %498 = vmatpush3.bf16.msra.mxu1 %v495_v8  ;;  %524 = vmatprep.subr.bf16.mxu0 %v523_v30  ;;  %v531_v35 = vpack.c.bf16 %v257_v34, %v256_v33  ;;  %v535_v38 = vpack.c.bf16 %v259_v37, %v258_v36  ;;  %v260_v39 = vld [vmem:[#allocation8 + $0x40] sm:$0xff]  ;;  %v261_v40 = vld [vmem:[#allocation8 + $0x48] sm:$0xff]  ;;  %v262_v42 = vld [vmem:[#allocation8 + $0x50] sm:$0xff] }
  0x54   :  { %500 = vmatprep.subr.bf16.mxu1 %v499_v11  ;;  %526 = vmatpush3.bf16.msra.mxu0 %v523_v30  ;;  %v539_v41 = vpack.c.bf16 %v261_v40, %v260_v39  ;;  %v263_v43 = vld [vmem:[#allocation8 + $0x58] sm:$0xff]  ;;  %v264_v45 = vld [vmem:[#allocation8 + $0x60] sm:$0xff]  ;;  %v265_v46 = vld [vmem:[#allocation8 + $0x68] sm:$0xff] }
  0x55   :  { %528 = vmatprep.subr.bf16.mxu0 %v527_v32  ;;  %v543_v44 = vpack.c.bf16 %v263_v43, %v262_v42  ;;  %v547_v47 = vpack.c.bf16 %v265_v46, %v264_v45  ;;  %v371_v48 = vld [vmem:[%s824_s2] ss:$0 sm:$0xff]  ;;  %v267_v58 = vld [vmem:[#allocation8 + $0x78] sm:$0xff] }
  0x56   :  { %v266_v57 = vld [vmem:[#allocation8 + $0x70] sm:$0xff] }
  0x57   :  { %502 = vmatpush3.bf16.msra.mxu1 %v499_v11  ;;  %v551_v59 = vpack.c.bf16 %v267_v58, %v266_v57  ;;  %v375_v60 = vld [vmem:[%s826_s4] ss:$0 sm:$0xff]  ;;  %s656_s4 = scalar_lea.vmem %s358_s9, 256 }
  0x58   :  { %504 = vmatprep.subr.bf16.mxu1 %v503_v14  ;;  %530 = vmatpush3.bf16.msra.mxu0 %v527_v32  ;;  %v376_v3 = vld [vmem:[%s828_s6] ss:$0 sm:$0xff]  ;;  %p657_p4 = scmp.ne.s32.totalorder %s358_s9, %s656_s4  ;;  %p662_p6 = scmp.lt.s32.totalorder %s656_s4, %s656_s4 }
  0x59   :  { %532 = vmatprep.subr.bf16.mxu0 %v531_v35 }
  0x5a   :  { %p663_p7 = por %p662_p6, %p661_p5 }
  0x5b   :  { %506 = vmatpush3.bf16.msra.mxu1 %v503_v14 }
  0x5c   :  { %508 = vmatprep.subr.bf16.mxu1 %v507_v17  ;;  %534 = vmatpush3.bf16.msra.mxu0 %v531_v35  ;;  %p664_p8 = pnand %p663_p7, %p657_p4 }
  0x5d   :  { %536 = vmatprep.subr.bf16.mxu0 %v535_v38 }
  0x5f   :  { %510 = vmatpush3.bf16.msra.mxu1 %v507_v17 }
  0x60   :  { %512 = vmatprep.subr.bf16.mxu1 %v511_v20  ;;  %538 = vmatpush3.bf16.msra.mxu0 %v535_v38 }
  0x61   :  { %540 = vmatprep.subr.bf16.mxu0 %v539_v41 }
  0x63   :  { %514 = vmatpush3.bf16.msra.mxu1 %v511_v20 }
  0x64   :  { %516 = vmatprep.subr.bf16.mxu1 %v515_v23  ;;  %542 = vmatpush3.bf16.msra.mxu0 %v539_v41 }
  0x65   :  { %544 = vmatprep.subr.bf16.mxu0 %v543_v44 }
  0x67   :  { %518 = vmatpush3.bf16.msra.mxu1 %v515_v23 }
  0x68   :  { %520 = vmatprep.subr.bf16.mxu1 %v519_v26  ;;  %546 = vmatpush3.bf16.msra.mxu0 %v543_v44 }
  0x69   :  { %548 = vmatprep.subr.bf16.mxu0 %v547_v47 }
  0x6b   :  { %522 = vmatpush3.bf16.msra.mxu1 %v519_v26 }
  0x6c   :  { %550 = vmatpush3.bf16.msra.mxu0 %v547_v47 }
  0x6d   :  { %552 = vmatprep.subr.bf16.mxu0 %v551_v59 }
  0x70   :  { %554 = vmatpush3.bf16.msra.mxu0 %v551_v59 }
 0x122   :  { %v143_v49 = vpop.f32.mrb[0].mxu0 }
 0x123   :  { %v419_v50 = vpop.f32.mrb[1].mxu0  ;;  %v144_v51 = vadd.f32 %v371_v48, %v143_v49 }
 0x124   :  { %v146_v52 = vpop.f32.mrb[2].mxu0 }
 0x125   :  { %v147_v53 = vadd.f32 %v371_v48, %v146_v52  ;;  %v420_v54 = vpop.f32.mrb[3].mxu0  ;;  %v150_v55 = vmax.f32 %v144_v51, 0.0 }
 0x127   :  { %v151_v56 = vmax.f32 %v147_v53, 0.0  ;;  %453 = vmatprep.mubr.f32.mxu1 %v150_v55 }
 0x129   :  { %454 = vmatmul.mubr.f32.vlgmr.msra.gmra.mrb[0].mxu1 %v151_v56 }
 0x1fc   :  { %v455_v61 = vpop.f32.mrb[0].mxu1 }
 0x1fd   :  { %v247_v62 = vadd.f32 %v455_v61, %v375_v60  ;;  %v241_v63 = vpop.f32.mrb[1].mxu1 }
 0x1fe   :  { %v242_v0 = vadd.f32 %v375_v60, %v241_v63 }
 0x1ff   :  { %v251_v2 = vmax.f32 %v247_v62, 0.0 }
 0x200   :  { %v250_v1 = vmax.f32 %v242_v0, 0.0 }
 0x202   :  { %488 = vmatprep.mubr.f32.mxu0 %v250_v1 }
 0x203   :  { %489 = vmatmul.mubr.f32.vlgmr.msra.gmra.mrb[4].mxu0 %v251_v2 }
 0x2d6   :  { %v490_v4 = vpop.f32.mrb[4].mxu0 }
 0x2d7   :  { %v347_v5 = vadd.f32 %v490_v4, %v376_v3  ;;  %v341_v6 = vpop.f32.mrb[5].mxu0 }
 0x2d8   :  { %v342_v7 = vadd.f32 %v376_v3, %v341_v6 }
 0x2d9   :  { %351 = vst [vmem:[#allocation10 + $0x8] sm:$0xff] %v347_v5 }
 0x2da   :  { %350 = vst [vmem:[#allocation10] sm:$0xff] %v342_v7 }
 0x2db   :  { %667 = shalt.err (!%p664_p8)
}
 0x2dc   :  { %s668_s6 = scalar_lea.hbm %s829_s7, 256 }
 0x2dd   :  { %p669_p9 = scmp.ne.s32.totalorder %s829_s7, %s668_s6  ;;  %p672_p10 = scmp.lt.u32.totalorder %s668_s6, %s829_s7 }
 0x2df   :  { %p674_p11 = pnand %p672_p10, %p669_p9 }
 0x2e1   :  { %677 = shalt.err (!%p674_p11)
}
 0x2e2   :  { %363 = dma.vmem_to_hbm [thread:$0]  %s358_s9, 256, %s829_s7, [#allocation4], %s691_s0, %s691_s0, %s692_s27  }
 0x2e3   :  { %684 = dma.done.wait [#allocation4], 256  }
 0x2e4   :  { %685 = vsyncadd [#allocation4], 4294967040 }
 0x2e5   :  { %367 = vsyncpa [#allocation3], 1 }
 0x2e6   :  { %368 = vsyncpa [#allocation6], 1 }
 0x2e7   :  { %369 = vsyncpa [#allocation9], 1 }
 0x2e8   :  { %370 = vsyncpa [#allocation4], 1 }

</bundles_post_ra>
